<compile_context>
chip_gen: v6e
topology: v6e:2x2x1
jax: 0.10.0
libtpu: 0.0.40
codegen_flags: <defaults>
</compile_context>

<pallas_src>
import functools

import jax
import jax.numpy as jnp
from jax.experimental import pallas as pl
from jax.experimental.pallas import tpu as pltpu


def _round_up(n, m):
    return ((n + m - 1) // m) * m


def _pad2d(a, rows, cols):
    """Zero-pad a 2-D array up to (rows, cols); no-op if already that shape."""
    r, c = a.shape
    if (r, c) == (rows, cols):
        return a
    return jnp.zeros((rows, cols), a.dtype).at[:r, :c].set(a)


def _choose_tm(m, tm_max):
    """Row-tile size: multiple of 8 (ideally 256), >=2 grid steps when
    possible (v7x megacore), minimal row padding."""
    m8 = _round_up(m, 8)
    if m8 <= 256:
        return m8                      # single full tile for small M
    cands = sorted({128} | set(range(256, max(tm_max, 256) + 1, 256)))
    cands = [c for c in cands if c <= tm_max] or [256]

    def score(c):
        mp = _round_up(m8, c)
        steps = mp // c
        waste = mp - m8
        return (0 if steps >= 2 else 1,      # prefer >=2 grid steps
                waste,                       # then minimal row padding
                0 if c % 256 == 0 else 1,    # then MXU-friendly 256 multiple
                -c)                          # then larger tiles

    return min(cands, key=score)


def _vmem_limit_bytes():
    """~75% of per-core VMEM (~48 MiB on v7x, ~96 MiB on v5e/v6e), capped."""
    try:
        cap = getattr(pltpu.get_tpu_info(), "vmem_capacity_bytes", None)
    except Exception:
        cap = None
    if not cap:
        cap = 128 * 1024 * 1024
    return int(min(cap * 3 // 4, 100 * 1024 * 1024))


def _head_kernel(x_ref, h_ref,
                 w1x_ref, b1x_ref,
                 w1h_ref, b1h_ref,
                 w2_ref, b2_ref,
                 w3_ref,
                 o_ref, *, h2p):
    # dense_1_input + relu   (dropout is identity in eval mode)
    a = jnp.dot(x_ref[...], w1x_ref[...],
                preferred_element_type=jnp.float32) + b1x_ref[...]
    a = jnp.maximum(a, 0.0)

    # Folded concat: cat(a, h) @ W2 == a @ W2[:2H, :] + h @ W2[2H:, :].
    # The halves are static slices of the single resident w2_ref (free views).
    acc = jnp.dot(a.astype(w2_ref.dtype), w2_ref[:h2p, :],
                  preferred_element_type=jnp.float32)

    # dense_1_hidden + relu
    b = jnp.dot(h_ref[...], w1h_ref[...],
                preferred_element_type=jnp.float32) + b1h_ref[...]
    b = jnp.maximum(b, 0.0)

    acc = acc + jnp.dot(b.astype(w2_ref.dtype), w2_ref[h2p:, :],
                        preferred_element_type=jnp.float32) + b2_ref[...]
    y = jnp.maximum(acc, 0.0)

    # out_proj (no bias) -> lane-dense (128-padded) output block.
    o_ref[...] = jnp.dot(y.astype(w3_ref.dtype), w3_ref[...],
                         preferred_element_type=jnp.float32).astype(o_ref.dtype)


@functools.partial(
    jax.jit, static_argnames=("tm", "compute_dtype", "single_buffer_weights"))
def _head_impl(x, hidden, params, *, tm, compute_dtype, single_buffer_weights):
    B, S, H = x.shape
    M = B * S
    w1x, b1x = params["w1x"], params["b1x"]
    w1h, b1h = params["w1h"], params["b1h"]
    w2, b2 = params["w2"], params["b2"]
    w3 = params["w3"]
    H2 = w1x.shape[1]          # 2*H
    L = w3.shape[1]            # num_labels

    # Lane-dense padded feature dims (multiples of 128 lanes). Zero padding is
    # exact: padded weight rows/cols are zero, padded biases are zero, and
    # relu(0) == 0, so padded columns never contribute to real outputs.
    HP = _round_up(H, 128)
    H2P = _round_up(H2, 128)
    LP = _round_up(L, 128)

    wdt = compute_dtype if compute_dtype is not None else w1x.dtype
    xdt = compute_dtype if compute_dtype is not None else x.dtype

    # Row tiling: multiple of 8/128/256, >=2 grid steps when possible.
    TM = _choose_tm(M, tm)
    MP = _round_up(M, TM)

    x2d = _pad2d(x.reshape(M, H).astype(xdt), MP, HP)
    h2d = _pad2d(hidden.reshape(M, H).astype(xdt), MP, HP)

    w1x_p = _pad2d(w1x.astype(wdt), HP, H2P)
    w1h_p = _pad2d(w1h.astype(wdt), HP, H2P)
    w3_p = _pad2d(w3.astype(wdt), HP, LP)

    # dense_2 weight passed as one resident array; halves sliced in-kernel.
    w2_c = w2.astype(wdt)
    if H2P == H2:
        w2_p = _pad2d(w2_c, 2 * H2P, HP)           # no-op when HP == H too
    else:
        w2_p = (jnp.zeros((2 * H2P, HP), wdt)
                .at[:H2, :H].set(w2_c[:H2, :])
                .at[H2P:H2P + H2, :H].set(w2_c[H2:, :]))

    # Biases stay float32 (added after f32 accumulation).
    b1x_p = _pad2d(b1x.astype(jnp.float32), 1, H2P)
    b1h_p = _pad2d(b1h.astype(jnp.float32), 1, H2P)
    b2_p = _pad2d(b2.astype(jnp.float32), 1, HP)

    grid = (MP // TM,)

    # Streamed row tiles advance with the grid; weights/biases stay resident
    # (constant index_map) and are single-buffered so the pipeliner does not
    # allocate a useless second weight copy.
    row_spec = lambda w: pl.BlockSpec((TM, w), lambda i: (i, 0))
    if single_buffer_weights:
        resident = lambda r, c: pl.BlockSpec((r, c), lambda i: (0, 0),
                                             pipeline_mode=pl.Buffered(1))
    else:
        resident = lambda r, c: pl.BlockSpec((r, c), lambda i: (0, 0))

    in_bytes = jnp.dtype(xdt).itemsize
    w_bytes = jnp.dtype(wdt).itemsize
    cost = pl.CostEstimate(
        flops=2 * MP * (4 * HP * H2P + HP * LP),
        transcendentals=0,
        bytes_accessed=(2 * MP * HP * in_bytes
                        + MP * LP * 4
                        + (4 * HP * H2P + HP * LP) * w_bytes
                        + (2 * H2P + HP) * 4),
    )

    out2d = pl.pallas_call(
        functools.partial(_head_kernel, h2p=H2P),
        out_shape=jax.ShapeDtypeStruct((MP, LP), jnp.float32),
        grid_spec=pltpu.PrefetchScalarGridSpec(
            num_scalar_prefetch=0,
            grid=grid,
            in_specs=[
                row_spec(HP),            # x tile
                row_spec(HP),            # hidden tile
                resident(HP, H2P),       # w1x
                resident(1, H2P),        # b1x
                resident(HP, H2P),       # w1h
                resident(1, H2P),        # b1h
                resident(2 * H2P, HP),   # w2 (both concat halves)
                resident(1, HP),         # b2
                resident(HP, LP),        # w3 (lane-padded)
            ],
            out_specs=row_spec(LP),
        ),
        compiler_params=pltpu.CompilerParams(
            dimension_semantics=("parallel",),   # shard rows across TCs (v7x)
            vmem_limit_bytes=_vmem_limit_bytes(),
        ),
        cost_estimate=cost,
    )(x2d, h2d, w1x_p, b1x_p, w1h_p, b1h_p, w2_p, b2_p, w3_p)

    return out2d[:M, :L].reshape(B, S, L)


def gpt2_classification_head(x, hidden, params, *, tm=512,
                             compute_dtype=jnp.bfloat16):
    """x, hidden: (B, S, H). Returns (B, S, num_labels) in float32.

    compute_dtype: storage/MXU dtype for inputs + weight matrices (default
    bfloat16). Biases and all accumulation stay float32. Pass None for a
    fully-f32 path.
    """
    # Single-buffered resident weights are the intended configuration; fall
    # back to default double-buffering if this JAX build rejects Buffered(1).
    try:
        return _head_impl(x, hidden, params, tm=tm, compute_dtype=compute_dtype,
                          single_buffer_weights=True)
    except Exception:
        return _head_impl(x, hidden, params, tm=tm, compute_dtype=compute_dtype,
                          single_buffer_weights=False)


def init_params(key, hidden_size, num_labels):
    """Deterministic synthetic parameters, stored as (in, out) matrices."""
    ks = jax.random.split(key, 7)
    H, H2, H4 = hidden_size, 2 * hidden_size, 4 * hidden_size
    scale = 0.02
    return {
        "w1x": scale * jax.random.normal(ks[0], (H, H2), jnp.float32),
        "b1x": scale * jax.random.normal(ks[1], (1, H2), jnp.float32),
        "w1h": scale * jax.random.normal(ks[2], (H, H2), jnp.float32),
        "b1h": scale * jax.random.normal(ks[3], (1, H2), jnp.float32),
        "w2":  scale * jax.random.normal(ks[4], (H4, H), jnp.float32),
        "b2":  scale * jax.random.normal(ks[5], (1, H), jnp.float32),
        "w3":  scale * jax.random.normal(ks[6], (H, num_labels), jnp.float32),
    }


def _reference(x, hidden, p):
    """Pure-JAX reference with identical semantics (dropout = identity)."""
    a = jax.nn.relu(x @ p["w1x"] + p["b1x"])
    b = jax.nn.relu(hidden @ p["w1h"] + p["b1h"])
    y = jax.nn.relu(jnp.concatenate([a, b], axis=2) @ p["w2"] + p["b2"])
    return y @ p["w3"]


if __name__ == "__main__":
    # Small shapes consistent with the module: batch=2, seq=8, n_embd=32, num_labels=4
    B, S, H, L = 2, 8, 32, 4
    key = jax.random.PRNGKey(0)
    kx, kh, kp = jax.random.split(key, 3)

    x = jax.random.normal(kx, (B, S, H), jnp.float32)
    hidden_states_last = jax.random.normal(kh, (B, S, H), jnp.float32)  # kwargs['hidden_states'][-1]
    params = init_params(kp, H, L)

    ref = _reference(x, hidden_states_last, params)

    # Exact (f32) path: tight tolerance against the pure-JAX reference.
    out_f32 = jax.block_until_ready(
        gpt2_classification_head(x, hidden_states_last, params,
                                 compute_dtype=None))
    assert out_f32.shape == (B, S, L), out_f32.shape
    assert jnp.allclose(out_f32, ref, atol=1e-4, rtol=1e-4), \
        float(jnp.max(jnp.abs(out_f32 - ref)))

    # Default (bf16 storage/MXU, f32 accumulation) path: loose tolerance.
    out_bf16 = jax.block_until_ready(
        gpt2_classification_head(x, hidden_states_last, params))
    assert out_bf16.shape == (B, S, L), out_bf16.shape
    assert jnp.allclose(out_bf16, ref, atol=2e-3, rtol=2e-2), \
        float(jnp.max(jnp.abs(out_bf16 - ref)))

    print("KERNEL_OK")
</pallas_src>

<mosaic_0001>
module attributes {stable_mosaic.version = 11 : i64} {
  func.func @_head_kernel(%arg0: i32, %arg1: memref<16x128xf32, #tpu.memory_space<vmem>>, %arg2: memref<16x128xf32, #tpu.memory_space<vmem>>, %arg3: memref<128x128xf32, #tpu.memory_space<vmem>>, %arg4: memref<1x128xf32, #tpu.memory_space<vmem>>, %arg5: memref<128x128xf32, #tpu.memory_space<vmem>>, %arg6: memref<1x128xf32, #tpu.memory_space<vmem>>, %arg7: memref<256x128xf32, #tpu.memory_space<vmem>>, %arg8: memref<1x128xf32, #tpu.memory_space<vmem>>, %arg9: memref<128x128xf32, #tpu.memory_space<vmem>>, %arg10: memref<16x128xf32, #tpu.memory_space<vmem>>) attributes {dimension_semantics = [#tpu.dimension_semantics<parallel>], iteration_bounds = array<i64: 1>, scalar_prefetch = 0 : i64, scratch_operands = 0 : i64, tpu.core_type = #tpu.core_type<tc>, window_params = [{transform_indices = @transform_0, window_bounds = array<i64: 16, 128>}, {transform_indices = @transform_1, window_bounds = array<i64: 16, 128>}, {pipeline_mode = #tpu.pipeline_mode<synchronous>, transform_indices = @transform_2, window_bounds = array<i64: 128, 128>}, {pipeline_mode = #tpu.pipeline_mode<synchronous>, transform_indices = @transform_3, window_bounds = array<i64: 1, 128>}, {pipeline_mode = #tpu.pipeline_mode<synchronous>, transform_indices = @transform_4, window_bounds = array<i64: 128, 128>}, {pipeline_mode = #tpu.pipeline_mode<synchronous>, transform_indices = @transform_5, window_bounds = array<i64: 1, 128>}, {pipeline_mode = #tpu.pipeline_mode<synchronous>, transform_indices = @transform_6, window_bounds = array<i64: 256, 128>}, {pipeline_mode = #tpu.pipeline_mode<synchronous>, transform_indices = @transform_7, window_bounds = array<i64: 1, 128>}, {pipeline_mode = #tpu.pipeline_mode<synchronous>, transform_indices = @transform_8, window_bounds = array<i64: 128, 128>}, {transform_indices = @transform_9, window_bounds = array<i64: 16, 128>}]} {
    %c0 = arith.constant 0 : index
    %c0_0 = arith.constant 0 : index
    %0 = vector.load %arg1[%c0, %c0_0] : memref<16x128xf32, #tpu.memory_space<vmem>>, vector<16x128xf32>
    %c0_1 = arith.constant 0 : index
    %c0_2 = arith.constant 0 : index
    %1 = vector.load %arg3[%c0_1, %c0_2] : memref<128x128xf32, #tpu.memory_space<vmem>>, vector<128x128xf32>
    %cst = arith.constant dense<0.000000e+00> : vector<16x128xf32>
    %2 = tpu.matmul %0, %1, %cst {dimension_numbers = #tpu.dot_dimension_numbers<[1], [0], [0], [1], [0, 0, 1, 1], [], []>} : vector<16x128xf32>, vector<128x128xf32>, vector<16x128xf32> -> vector<16x128xf32>
    %c0_3 = arith.constant 0 : index
    %c0_4 = arith.constant 0 : index
    %3 = vector.load %arg4[%c0_3, %c0_4] : memref<1x128xf32, #tpu.memory_space<vmem>>, vector<1x128xf32>
    %4 = vector.broadcast %3 : vector<1x128xf32> to vector<16x128xf32>
    %5 = arith.addf %2, %4 : vector<16x128xf32>
    %cst_5 = arith.constant 0.000000e+00 : f32
    %6 = vector.broadcast %cst_5 : f32 to vector<16x128xf32>
    %7 = arith.maximumf %5, %6 : vector<16x128xf32>
    %c0_6 = arith.constant 0 : index
    %c0_7 = arith.constant 0 : index
    %8 = vector.load %arg7[%c0_6, %c0_7] : memref<256x128xf32, #tpu.memory_space<vmem>>, vector<128x128xf32>
    %cst_8 = arith.constant dense<0.000000e+00> : vector<16x128xf32>
    %9 = tpu.matmul %7, %8, %cst_8 {dimension_numbers = #tpu.dot_dimension_numbers<[1], [0], [0], [1], [0, 0, 1, 1], [], []>} : vector<16x128xf32>, vector<128x128xf32>, vector<16x128xf32> -> vector<16x128xf32>
    %c0_9 = arith.constant 0 : index
    %c0_10 = arith.constant 0 : index
    %10 = vector.load %arg2[%c0_9, %c0_10] : memref<16x128xf32, #tpu.memory_space<vmem>>, vector<16x128xf32>
    %c0_11 = arith.constant 0 : index
    %c0_12 = arith.constant 0 : index
    %11 = vector.load %arg5[%c0_11, %c0_12] : memref<128x128xf32, #tpu.memory_space<vmem>>, vector<128x128xf32>
    %cst_13 = arith.constant dense<0.000000e+00> : vector<16x128xf32>
    %12 = tpu.matmul %10, %11, %cst_13 {dimension_numbers = #tpu.dot_dimension_numbers<[1], [0], [0], [1], [0, 0, 1, 1], [], []>} : vector<16x128xf32>, vector<128x128xf32>, vector<16x128xf32> -> vector<16x128xf32>
    %c0_14 = arith.constant 0 : index
    %c0_15 = arith.constant 0 : index
    %13 = vector.load %arg6[%c0_14, %c0_15] : memref<1x128xf32, #tpu.memory_space<vmem>>, vector<1x128xf32>
    %14 = vector.broadcast %13 : vector<1x128xf32> to vector<16x128xf32>
    %15 = arith.addf %12, %14 : vector<16x128xf32>
    %cst_16 = arith.constant 0.000000e+00 : f32
    %16 = vector.broadcast %cst_16 : f32 to vector<16x128xf32>
    %17 = arith.maximumf %15, %16 : vector<16x128xf32>
    %c128 = arith.constant 128 : index
    %c0_17 = arith.constant 0 : index
    %18 = vector.load %arg7[%c128, %c0_17] : memref<256x128xf32, #tpu.memory_space<vmem>>, vector<128x128xf32>
    %cst_18 = arith.constant dense<0.000000e+00> : vector<16x128xf32>
    %19 = tpu.matmul %17, %18, %cst_18 {dimension_numbers = #tpu.dot_dimension_numbers<[1], [0], [0], [1], [0, 0, 1, 1], [], []>} : vector<16x128xf32>, vector<128x128xf32>, vector<16x128xf32> -> vector<16x128xf32>
    %20 = arith.addf %9, %19 : vector<16x128xf32>
    %c0_19 = arith.constant 0 : index
    %c0_20 = arith.constant 0 : index
    %21 = vector.load %arg8[%c0_19, %c0_20] : memref<1x128xf32, #tpu.memory_space<vmem>>, vector<1x128xf32>
    %22 = vector.broadcast %21 : vector<1x128xf32> to vector<16x128xf32>
    %23 = arith.addf %20, %22 : vector<16x128xf32>
    %cst_21 = arith.constant 0.000000e+00 : f32
    %24 = vector.broadcast %cst_21 : f32 to vector<16x128xf32>
    %25 = arith.maximumf %23, %24 : vector<16x128xf32>
    %c0_22 = arith.constant 0 : index
    %c0_23 = arith.constant 0 : index
    %26 = vector.load %arg9[%c0_22, %c0_23] : memref<128x128xf32, #tpu.memory_space<vmem>>, vector<128x128xf32>
    %cst_24 = arith.constant dense<0.000000e+00> : vector<16x128xf32>
    %27 = tpu.matmul %25, %26, %cst_24 {dimension_numbers = #tpu.dot_dimension_numbers<[1], [0], [0], [1], [0, 0, 1, 1], [], []>} : vector<16x128xf32>, vector<128x128xf32>, vector<16x128xf32> -> vector<16x128xf32>
    %c0_25 = arith.constant 0 : index
    %c0_26 = arith.constant 0 : index
    %28 = vector.load %arg10[%c0_25, %c0_26] : memref<16x128xf32, #tpu.memory_space<vmem>>, vector<16x128xf32>
    tpu.vector_store %arg10[%c0_25, %c0_26], %27 {strides = array<i32>} : memref<16x128xf32, #tpu.memory_space<vmem>>, vector<16x128xf32>,
    return
  }
  func.func @transform_0(%arg0: i32) -> (i32, i32) {
    %c0_i32 = arith.constant 0 : i32
    %c0_i32_0 = arith.constant 0 : i32
    return %arg0, %c0_i32 : i32, i32
  }
  func.func @transform_1(%arg0: i32) -> (i32, i32) {
    %c0_i32 = arith.constant 0 : i32
    %c0_i32_0 = arith.constant 0 : i32
    return %arg0, %c0_i32 : i32, i32
  }
  func.func @transform_2(%arg0: i32) -> (i32, i32) {
    %c0_i32 = arith.constant 0 : i32
    %c0_i32_0 = arith.constant 0 : i32
    %c0_i32_1 = arith.constant 0 : i32
    return %c0_i32, %c0_i32_0 : i32, i32
  }
  func.func @transform_3(%arg0: i32) -> (i32, i32) {
    %c0_i32 = arith.constant 0 : i32
    %c0_i32_0 = arith.constant 0 : i32
    %c0_i32_1 = arith.constant 0 : i32
    return %c0_i32, %c0_i32_0 : i32, i32
  }
  func.func @transform_4(%arg0: i32) -> (i32, i32) {
    %c0_i32 = arith.constant 0 : i32
    %c0_i32_0 = arith.constant 0 : i32
    %c0_i32_1 = arith.constant 0 : i32
    return %c0_i32, %c0_i32_0 : i32, i32
  }
  func.func @transform_5(%arg0: i32) -> (i32, i32) {
    %c0_i32 = arith.constant 0 : i32
    %c0_i32_0 = arith.constant 0 : i32
    %c0_i32_1 = arith.constant 0 : i32
    return %c0_i32, %c0_i32_0 : i32, i32
  }
  func.func @transform_6(%arg0: i32) -> (i32, i32) {
    %c0_i32 = arith.constant 0 : i32
    %c0_i32_0 = arith.constant 0 : i32
    %c0_i32_1 = arith.constant 0 : i32
    return %c0_i32, %c0_i32_0 : i32, i32
  }
  func.func @transform_7(%arg0: i32) -> (i32, i32) {
    %c0_i32 = arith.constant 0 : i32
    %c0_i32_0 = arith.constant 0 : i32
    %c0_i32_1 = arith.constant 0 : i32
    return %c0_i32, %c0_i32_0 : i32, i32
  }
  func.func @transform_8(%arg0: i32) -> (i32, i32) {
    %c0_i32 = arith.constant 0 : i32
    %c0_i32_0 = arith.constant 0 : i32
    %c0_i32_1 = arith.constant 0 : i32
    return %c0_i32, %c0_i32_0 : i32, i32
  }
  func.func @transform_9(%arg0: i32) -> (i32, i32) {
    %c0_i32 = arith.constant 0 : i32
    %c0_i32_0 = arith.constant 0 : i32
    return %arg0, %c0_i32 : i32, i32
  }
}

module attributes {stable_mosaic.version = 11 : i64} {
  func.func @_head_kernel(%arg0: i32, %arg1: memref<16x128xf32, #tpu.memory_space<vmem>>, %arg2: memref<16x128xf32, #tpu.memory_space<vmem>>, %arg3: memref<128x128xf32, #tpu.memory_space<vmem>>, %arg4: memref<1x128xf32, #tpu.memory_space<vmem>>, %arg5: memref<128x128xf32, #tpu.memory_space<vmem>>, %arg6: memref<1x128xf32, #tpu.memory_space<vmem>>, %arg7: memref<256x128xf32, #tpu.memory_space<vmem>>, %arg8: memref<1x128xf32, #tpu.memory_space<vmem>>, %arg9: memref<128x128xf32, #tpu.memory_space<vmem>>, %arg10: memref<16x128xf32, #tpu.memory_space<vmem>>) attributes {dimension_semantics = [#tpu.dimension_semantics<parallel>], iteration_bounds = array<i64: 1>, scalar_prefetch = 0 : i64, scratch_operands = 0 : i64, tpu.core_type = #tpu.core_type<tc>, window_params = [{transform_indices = @transform_0, window_bounds = array<i64: 16, 128>}, {transform_indices = @transform_1, window_bounds = array<i64: 16, 128>}, {pipeline_mode = #tpu.pipeline_mode<synchronous>, transform_indices = @transform_2, window_bounds = array<i64: 128, 128>}, {pipeline_mode = #tpu.pipeline_mode<synchronous>, transform_indices = @transform_3, window_bounds = array<i64: 1, 128>}, {pipeline_mode = #tpu.pipeline_mode<synchronous>, transform_indices = @transform_4, window_bounds = array<i64: 128, 128>}, {pipeline_mode = #tpu.pipeline_mode<synchronous>, transform_indices = @transform_5, window_bounds = array<i64: 1, 128>}, {pipeline_mode = #tpu.pipeline_mode<synchronous>, transform_indices = @transform_6, window_bounds = array<i64: 256, 128>}, {pipeline_mode = #tpu.pipeline_mode<synchronous>, transform_indices = @transform_7, window_bounds = array<i64: 1, 128>}, {pipeline_mode = #tpu.pipeline_mode<synchronous>, transform_indices = @transform_8, window_bounds = array<i64: 128, 128>}, {transform_indices = @transform_9, window_bounds = array<i64: 16, 128>}]} {
    %c0 = arith.constant 0 : index
    %c0_0 = arith.constant 0 : index
    %0 = vector.load %arg1[%c0, %c0_0] : memref<16x128xf32, #tpu.memory_space<vmem>>, vector<16x128xf32>
    %c0_1 = arith.constant 0 : index
    %c0_2 = arith.constant 0 : index
    %1 = vector.load %arg3[%c0_1, %c0_2] : memref<128x128xf32, #tpu.memory_space<vmem>>, vector<128x128xf32>
    %cst = arith.constant dense<0.000000e+00> : vector<16x128xf32>
    %2 = tpu.matmul %0, %1, %cst {dimension_numbers = #tpu.dot_dimension_numbers<[1], [0], [0], [1], [0, 0, 1, 1], [], []>} : vector<16x128xf32>, vector<128x128xf32>, vector<16x128xf32> -> vector<16x128xf32>
    %c0_3 = arith.constant 0 : index
    %c0_4 = arith.constant 0 : index
    %3 = vector.load %arg4[%c0_3, %c0_4] : memref<1x128xf32, #tpu.memory_space<vmem>>, vector<1x128xf32>
    %4 = vector.broadcast %3 : vector<1x128xf32> to vector<16x128xf32>
    %5 = arith.addf %2, %4 : vector<16x128xf32>
    %cst_5 = arith.constant 0.000000e+00 : f32
    %6 = vector.broadcast %cst_5 : f32 to vector<16x128xf32>
    %7 = arith.maximumf %5, %6 : vector<16x128xf32>
    %c0_6 = arith.constant 0 : index
    %c0_7 = arith.constant 0 : index
    %8 = vector.load %arg7[%c0_6, %c0_7] : memref<256x128xf32, #tpu.memory_space<vmem>>, vector<128x128xf32>
    %cst_8 = arith.constant dense<0.000000e+00> : vector<16x128xf32>
    %9 = tpu.matmul %7, %8, %cst_8 {dimension_numbers = #tpu.dot_dimension_numbers<[1], [0], [0], [1], [0, 0, 1, 1], [], []>} : vector<16x128xf32>, vector<128x128xf32>, vector<16x128xf32> -> vector<16x128xf32>
    %c0_9 = arith.constant 0 : index
    %c0_10 = arith.constant 0 : index
    %10 = vector.load %arg2[%c0_9, %c0_10] : memref<16x128xf32, #tpu.memory_space<vmem>>, vector<16x128xf32>
    %c0_11 = arith.constant 0 : index
    %c0_12 = arith.constant 0 : index
    %11 = vector.load %arg5[%c0_11, %c0_12] : memref<128x128xf32, #tpu.memory_space<vmem>>, vector<128x128xf32>
    %cst_13 = arith.constant dense<0.000000e+00> : vector<16x128xf32>
    %12 = tpu.matmul %10, %11, %cst_13 {dimension_numbers = #tpu.dot_dimension_numbers<[1], [0], [0], [1], [0, 0, 1, 1], [], []>} : vector<16x128xf32>, vector<128x128xf32>, vector<16x128xf32> -> vector<16x128xf32>
    %c0_14 = arith.constant 0 : index
    %c0_15 = arith.constant 0 : index
    %13 = vector.load %arg6[%c0_14, %c0_15] : memref<1x128xf32, #tpu.memory_space<vmem>>, vector<1x128xf32>
    %14 = vector.broadcast %13 : vector<1x128xf32> to vector<16x128xf32>
    %15 = arith.addf %12, %14 : vector<16x128xf32>
    %cst_16 = arith.constant 0.000000e+00 : f32
    %16 = vector.broadcast %cst_16 : f32 to vector<16x128xf32>
    %17 = arith.maximumf %15, %16 : vector<16x128xf32>
    %c128 = arith.constant 128 : index
    %c0_17 = arith.constant 0 : index
    %18 = vector.load %arg7[%c128, %c0_17] : memref<256x128xf32, #tpu.memory_space<vmem>>, vector<128x128xf32>
    %cst_18 = arith.constant dense<0.000000e+00> : vector<16x128xf32>
    %19 = tpu.matmul %17, %18, %cst_18 {dimension_numbers = #tpu.dot_dimension_numbers<[1], [0], [0], [1], [0, 0, 1, 1], [], []>} : vector<16x128xf32>, vector<128x128xf32>, vector<16x128xf32> -> vector<16x128xf32>
    %20 = arith.addf %9, %19 : vector<16x128xf32>
    %c0_19 = arith.constant 0 : index
    %c0_20 = arith.constant 0 : index
    %21 = vector.load %arg8[%c0_19, %c0_20] : memref<1x128xf32, #tpu.memory_space<vmem>>, vector<1x128xf32>
    %22 = vector.broadcast %21 : vector<1x128xf32> to vector<16x128xf32>
    %23 = arith.addf %20, %22 : vector<16x128xf32>
    %cst_21 = arith.constant 0.000000e+00 : f32
    %24 = vector.broadcast %cst_21 : f32 to vector<16x128xf32>
    %25 = arith.maximumf %23, %24 : vector<16x128xf32>
    %c0_22 = arith.constant 0 : index
    %c0_23 = arith.constant 0 : index
    %26 = vector.load %arg9[%c0_22, %c0_23] : memref<128x128xf32, #tpu.memory_space<vmem>>, vector<128x128xf32>
    %cst_24 = arith.constant dense<0.000000e+00> : vector<16x128xf32>
    %27 = tpu.matmul %25, %26, %cst_24 {dimension_numbers = #tpu.dot_dimension_numbers<[1], [0], [0], [1], [0, 0, 1, 1], [], []>} : vector<16x128xf32>, vector<128x128xf32>, vector<16x128xf32> -> vector<16x128xf32>
    %c0_25 = arith.constant 0 : index
    %c0_26 = arith.constant 0 : index
    %28 = vector.load %arg10[%c0_25, %c0_26] : memref<16x128xf32, #tpu.memory_space<vmem>>, vector<16x128xf32>
    tpu.vector_store %arg10[%c0_25, %c0_26], %27 {strides = array<i32>} : memref<16x128xf32, #tpu.memory_space<vmem>>, vector<16x128xf32>,
    return
  }
  func.func @transform_0(%arg0: i32) -> (i32, i32) {
    %c0_i32 = arith.constant 0 : i32
    %c0_i32_0 = arith.constant 0 : i32
    return %arg0, %c0_i32 : i32, i32
  }
  func.func @transform_1(%arg0: i32) -> (i32, i32) {
    %c0_i32 = arith.constant 0 : i32
    %c0_i32_0 = arith.constant 0 : i32
    return %arg0, %c0_i32 : i32, i32
  }
  func.func @transform_2(%arg0: i32) -> (i32, i32) {
    %c0_i32 = arith.constant 0 : i32
    %c0_i32_0 = arith.constant 0 : i32
    %c0_i32_1 = arith.constant 0 : i32
    return %c0_i32, %c0_i32_0 : i32, i32
  }
  func.func @transform_3(%arg0: i32) -> (i32, i32) {
    %c0_i32 = arith.constant 0 : i32
    %c0_i32_0 = arith.constant 0 : i32
    %c0_i32_1 = arith.constant 0 : i32
    return %c0_i32, %c0_i32_0 : i32, i32
  }
  func.func @transform_4(%arg0: i32) -> (i32, i32) {
    %c0_i32 = arith.constant 0 : i32
    %c0_i32_0 = arith.constant 0 : i32
    %c0_i32_1 = arith.constant 0 : i32
    return %c0_i32, %c0_i32_0 : i32, i32
  }
  func.func @transform_5(%arg0: i32) -> (i32, i32) {
    %c0_i32 = arith.constant 0 : i32
    %c0_i32_0 = arith.constant 0 : i32
    %c0_i32_1 = arith.constant 0 : i32
    return %c0_i32, %c0_i32_0 : i32, i32
  }
  func.func @transform_6(%arg0: i32) -> (i32, i32) {
    %c0_i32 = arith.constant 0 : i32
    %c0_i32_0 = arith.constant 0 : i32
    %c0_i32_1 = arith.constant 0 : i32
    return %c0_i32, %c0_i32_0 : i32, i32
  }
  func.func @transform_7(%arg0: i32) -> (i32, i32) {
    %c0_i32 = arith.constant 0 : i32
    %c0_i32_0 = arith.constant 0 : i32
    %c0_i32_1 = arith.constant 0 : i32
    return %c0_i32, %c0_i32_0 : i32, i32
  }
  func.func @transform_8(%arg0: i32) -> (i32, i32) {
    %c0_i32 = arith.constant 0 : i32
    %c0_i32_0 = arith.constant 0 : i32
    %c0_i32_1 = arith.constant 0 : i32
    return %c0_i32, %c0_i32_0 : i32, i32
  }
  func.func @transform_9(%arg0: i32) -> (i32, i32) {
    %c0_i32 = arith.constant 0 : i32
    %c0_i32_0 = arith.constant 0 : i32
    return %arg0, %c0_i32 : i32, i32
  }
}

</mosaic_0001>

<bundles_post_ra>
// kernel: _head_impl.1
= control target key start
LH: loop header
LB: loop body
LE: loop exit
PB: predicated region body
PF: predicated region fallthrough
CT: control target
= control target key end

     0   :  { %s1111_s2 = inlined_call_operand.vmem [shape: f32[128,128], index: 2, kind: input, shape index: {}]   ;;  %s1112_s4 = inlined_call_operand.vmem [shape: f32[128,128], index: 4, kind: input, shape index: {}]   ;;  %s1113_s0 = inlined_call_operand.vmem [shape: f32[16,128], index: 0, kind: input, shape index: {}]   ;;  %s1114_s1 = inlined_call_operand.vmem [shape: f32[16,128], index: 1, kind: input, shape index: {}]   ;;  %s1115_s6 = inlined_call_operand.vmem [shape: f32[256,128], index: 6, kind: input, shape index: {}]   ;;  %s1116_s8 = inlined_call_operand.vmem [shape: f32[128,128], index: 8, kind: input, shape index: {}]   ;;  %s1117_s3 = inlined_call_operand.vmem [shape: f32[1,128], index: 3, kind: input, shape index: {}]   ;;  %s1118_s5 = inlined_call_operand.vmem [shape: f32[1,128], index: 5, kind: input, shape index: {}]   ;;  %s1119_s7 = inlined_call_operand.vmem [shape: f32[1,128], index: 7, kind: input, shape index: {}]   ;;  %s1120_s9 = inlined_call_operand.vmem [shape: f32[16,128], index: 9, kind: output, shape index: {}]  }
   0x1   :  { %v49_v0 = vld [vmem:[%s1111_s2 + $0x78] sm:$0xff]  ;;  %v48_v2 = vld [vmem:[%s1111_s2 + $0x70] sm:$0xff]  ;;  %v47_v4 = vld [vmem:[%s1111_s2 + $0x68] sm:$0xff] }
   0x2   :  { %v167_v1 = vld [vmem:[%s1112_s4 + $0x78] sm:$0xff]  ;;  %619 = vmatprep.subr.mxu0 %v49_v0  ;;  %v166_v3 = vld [vmem:[%s1112_s4 + $0x70] sm:$0xff]  ;;  %v165_v5 = vld [vmem:[%s1112_s4 + $0x68] sm:$0xff] }
   0x3   :  { %654 = vmatprep.subr.mxu1 %v167_v1  ;;  %620 = vmatpush3.msra.mxu0 %v49_v0  ;;  %v46_v6 = vld [vmem:[%s1111_s2 + $0x60] sm:$0xff]  ;;  %v45_v8 = vld [vmem:[%s1111_s2 + $0x58] sm:$0xff]  ;;  %v44_v10 = vld [vmem:[%s1111_s2 + $0x50] sm:$0xff] }
   0x4   :  { %655 = vmatpush3.msra.mxu1 %v167_v1  ;;  %621 = vmatprep.subr.mxu0 %v48_v2  ;;  %v164_v7 = vld [vmem:[%s1112_s4 + $0x60] sm:$0xff]  ;;  %v163_v9 = vld [vmem:[%s1112_s4 + $0x58] sm:$0xff]  ;;  %v162_v11 = vld [vmem:[%s1112_s4 + $0x50] sm:$0xff] }
   0x5   :  { %656 = vmatprep.subr.mxu1 %v166_v3  ;;  %622 = vmatpush3.msra.mxu0 %v48_v2  ;;  %v43_v12 = vld [vmem:[%s1111_s2 + $0x48] sm:$0xff]  ;;  %v42_v14 = vld [vmem:[%s1111_s2 + $0x40] sm:$0xff]  ;;  %v41_v16 = vld [vmem:[%s1111_s2 + $0x38] sm:$0xff] }
   0x6   :  { %657 = vmatpush3.msra.mxu1 %v166_v3  ;;  %623 = vmatprep.subr.mxu0 %v47_v4  ;;  %v161_v13 = vld [vmem:[%s1112_s4 + $0x48] sm:$0xff]  ;;  %v160_v15 = vld [vmem:[%s1112_s4 + $0x40] sm:$0xff]  ;;  %v159_v17 = vld [vmem:[%s1112_s4 + $0x38] sm:$0xff] }
   0x7   :  { %658 = vmatprep.subr.mxu1 %v165_v5  ;;  %624 = vmatpush3.msra.mxu0 %v47_v4  ;;  %v40_v18 = vld [vmem:[%s1111_s2 + $0x30] sm:$0xff]  ;;  %v39_v20 = vld [vmem:[%s1111_s2 + $0x28] sm:$0xff]  ;;  %v38_v22 = vld [vmem:[%s1111_s2 + $0x20] sm:$0xff] }
   0x8   :  { %659 = vmatpush3.msra.mxu1 %v165_v5  ;;  %625 = vmatprep.subr.mxu0 %v46_v6  ;;  %v158_v19 = vld [vmem:[%s1112_s4 + $0x30] sm:$0xff]  ;;  %v157_v21 = vld [vmem:[%s1112_s4 + $0x28] sm:$0xff]  ;;  %v156_v23 = vld [vmem:[%s1112_s4 + $0x20] sm:$0xff] }
   0x9   :  { %660 = vmatprep.subr.mxu1 %v164_v7  ;;  %626 = vmatpush3.msra.mxu0 %v46_v6  ;;  %v37_v24 = vld [vmem:[%s1111_s2 + $0x18] sm:$0xff]  ;;  %v36_v26 = vld [vmem:[%s1111_s2 + $0x10] sm:$0xff]  ;;  %v35_v28 = vld [vmem:[%s1111_s2 + $0x8] sm:$0xff] }
   0xa   :  { %661 = vmatpush3.msra.mxu1 %v164_v7  ;;  %627 = vmatprep.subr.mxu0 %v45_v8  ;;  %v155_v25 = vld [vmem:[%s1112_s4 + $0x18] sm:$0xff]  ;;  %v154_v27 = vld [vmem:[%s1112_s4 + $0x10] sm:$0xff]  ;;  %v153_v29 = vld [vmem:[%s1112_s4 + $0x8] sm:$0xff] }
   0xb   :  { %662 = vmatprep.subr.mxu1 %v163_v9  ;;  %628 = vmatpush3.msra.mxu0 %v45_v8  ;;  %v34_v30 = vld [vmem:[%s1111_s2] sm:$0xff]  ;;  %v33_v34 = vld [vmem:[%s1113_s0 + $0x8] sm:$0xff]  ;;  %v267_v36 = vld [vmem:[%s1115_s6 + $0xf8] sm:$0xff] }
   0xc   :  { %663 = vmatpush3.msra.mxu1 %v163_v9  ;;  %629 = vmatprep.subr.mxu0 %v44_v10  ;;  %v152_v31 = vld [vmem:[%s1112_s4] sm:$0xff]  ;;  %v151_v35 = vld [vmem:[%s1114_s1 + $0x8] sm:$0xff]  ;;  %v149_v37 = vld [vmem:[%s1115_s6 + $0x78] sm:$0xff] }
   0xd   :  { %664 = vmatprep.subr.mxu1 %v162_v11  ;;  %630 = vmatpush3.msra.mxu0 %v44_v10  ;;  %v32_v32 = vld [vmem:[%s1113_s0] sm:$0xff]  ;;  %v266_v38 = vld [vmem:[%s1115_s6 + $0xf0] sm:$0xff]  ;;  %v265_v40 = vld [vmem:[%s1115_s6 + $0xe8] sm:$0xff] }
   0xe   :  { %665 = vmatpush3.msra.mxu1 %v162_v11  ;;  %631 = vmatprep.subr.mxu0 %v43_v12  ;;  %v150_v33 = vld [vmem:[%s1114_s1] sm:$0xff]  ;;  %v148_v39 = vld [vmem:[%s1115_s6 + $0x70] sm:$0xff]  ;;  %v147_v41 = vld [vmem:[%s1115_s6 + $0x68] sm:$0xff] }
   0xf   :  { %666 = vmatprep.subr.mxu1 %v161_v13  ;;  %632 = vmatpush3.msra.mxu0 %v43_v12  ;;  %v264_v42 = vld [vmem:[%s1115_s6 + $0xe0] sm:$0xff]  ;;  %v263_v44 = vld [vmem:[%s1115_s6 + $0xd8] sm:$0xff]  ;;  %v262_v46 = vld [vmem:[%s1115_s6 + $0xd0] sm:$0xff] }
  0x10   :  { %667 = vmatpush3.msra.mxu1 %v161_v13  ;;  %633 = vmatprep.subr.mxu0 %v42_v14  ;;  %v146_v43 = vld [vmem:[%s1115_s6 + $0x60] sm:$0xff]  ;;  %v145_v45 = vld [vmem:[%s1115_s6 + $0x58] sm:$0xff]  ;;  %v144_v47 = vld [vmem:[%s1115_s6 + $0x50] sm:$0xff] }
  0x11   :  { %668 = vmatprep.subr.mxu1 %v160_v15  ;;  %634 = vmatpush3.msra.mxu0 %v42_v14  ;;  %v261_v48 = vld [vmem:[%s1115_s6 + $0xc8] sm:$0xff]  ;;  %v260_v50 = vld [vmem:[%s1115_s6 + $0xc0] sm:$0xff]  ;;  %v259_v52 = vld [vmem:[%s1115_s6 + $0xb8] sm:$0xff] }
  0x12   :  { %669 = vmatpush3.msra.mxu1 %v160_v15  ;;  %635 = vmatprep.subr.mxu0 %v41_v16  ;;  %v143_v49 = vld [vmem:[%s1115_s6 + $0x48] sm:$0xff]  ;;  %v142_v51 = vld [vmem:[%s1115_s6 + $0x40] sm:$0xff]  ;;  %v141_v53 = vld [vmem:[%s1115_s6 + $0x38] sm:$0xff] }
  0x13   :  { %670 = vmatprep.subr.mxu1 %v159_v17  ;;  %636 = vmatpush3.msra.mxu0 %v41_v16  ;;  %v258_v54 = vld [vmem:[%s1115_s6 + $0xb0] sm:$0xff]  ;;  %v257_v56 = vld [vmem:[%s1115_s6 + $0xa8] sm:$0xff]  ;;  %v256_v58 = vld [vmem:[%s1115_s6 + $0xa0] sm:$0xff] }
  0x14   :  { %671 = vmatpush3.msra.mxu1 %v159_v17  ;;  %637 = vmatprep.subr.mxu0 %v40_v18  ;;  %v140_v55 = vld [vmem:[%s1115_s6 + $0x30] sm:$0xff]  ;;  %v139_v57 = vld [vmem:[%s1115_s6 + $0x28] sm:$0xff]  ;;  %v138_v59 = vld [vmem:[%s1115_s6 + $0x20] sm:$0xff] }
  0x15   :  { %672 = vmatprep.subr.mxu1 %v158_v19  ;;  %638 = vmatpush3.msra.mxu0 %v40_v18  ;;  %v255_v60 = vld [vmem:[%s1115_s6 + $0x98] sm:$0xff]  ;;  %v254_v62 = vld [vmem:[%s1115_s6 + $0x90] sm:$0xff]  ;;  %v253_v0 = vld [vmem:[%s1115_s6 + $0x88] sm:$0xff] }
  0x16   :  { %673 = vmatpush3.msra.mxu1 %v158_v19  ;;  %639 = vmatprep.subr.mxu0 %v39_v20  ;;  %v137_v61 = vld [vmem:[%s1115_s6 + $0x18] sm:$0xff]  ;;  %v136_v63 = vld [vmem:[%s1115_s6 + $0x10] sm:$0xff]  ;;  %v135_v1 = vld [vmem:[%s1115_s6 + $0x8] sm:$0xff] }
  0x17   :  { %674 = vmatprep.subr.mxu1 %v157_v21  ;;  %640 = vmatpush3.msra.mxu0 %v39_v20  ;;  %v252_v2 = vld [vmem:[%s1115_s6 + $0x80] sm:$0xff]  ;;  %v444_v4 = vld [vmem:[%s1116_s8 + $0x78] sm:$0xff]  ;;  %v443_v19 = vld [vmem:[%s1116_s8 + $0x70] sm:$0xff] }
  0x18   :  { %675 = vmatpush3.msra.mxu1 %v157_v21  ;;  %641 = vmatprep.subr.mxu0 %v38_v22  ;;  %v134_v3 = vld [vmem:[%s1115_s6] sm:$0xff]  ;;  %v442_v20 = vld [vmem:[%s1116_s8 + $0x68] sm:$0xff] }
  0x19   :  { %676 = vmatprep.subr.mxu1 %v156_v23  ;;  %642 = vmatpush3.msra.mxu0 %v38_v22  ;;  %v526_v5 = vld [vmem:[%s1117_s3] ss:$0 sm:$0xff]  ;;  %v440_v22 = vld [vmem:[%s1116_s8 + $0x58] sm:$0xff] }
  0x1a   :  { %677 = vmatpush3.msra.mxu1 %v156_v23  ;;  %643 = vmatprep.subr.mxu0 %v37_v24  ;;  %v527_v6 = vld [vmem:[%s1118_s5] ss:$0 sm:$0xff]  ;;  %v439_v23 = vld [vmem:[%s1116_s8 + $0x50] sm:$0xff] }
  0x1b   :  { %678 = vmatprep.subr.mxu1 %v155_v25  ;;  %644 = vmatpush3.msra.mxu0 %v37_v24  ;;  %v441_v21 = vld [vmem:[%s1116_s8 + $0x60] sm:$0xff]  ;;  %v438_v24 = vld [vmem:[%s1116_s8 + $0x48] sm:$0xff] }
  0x1c   :  { %679 = vmatpush3.msra.mxu1 %v155_v25  ;;  %645 = vmatprep.subr.mxu0 %v36_v26  ;;  %v437_v25 = vld [vmem:[%s1116_s8 + $0x40] sm:$0xff] }
  0x1d   :  { %680 = vmatprep.subr.mxu1 %v154_v27  ;;  %646 = vmatpush3.msra.mxu0 %v36_v26  ;;  %v436_v26 = vld [vmem:[%s1116_s8 + $0x38] sm:$0xff] }
  0x1e   :  { %681 = vmatpush3.msra.mxu1 %v154_v27  ;;  %647 = vmatprep.subr.mxu0 %v35_v28  ;;  %v435_v27 = vld [vmem:[%s1116_s8 + $0x30] sm:$0xff] }
  0x1f   :  { %682 = vmatprep.subr.mxu1 %v153_v29  ;;  %648 = vmatpush3.msra.mxu0 %v35_v28  ;;  %v434_v28 = vld [vmem:[%s1116_s8 + $0x28] sm:$0xff] }
  0x20   :  { %683 = vmatpush3.msra.mxu1 %v153_v29  ;;  %649 = vmatprep.subr.mxu0 %v34_v30  ;;  %v433_v29 = vld [vmem:[%s1116_s8 + $0x20] sm:$0xff] }
  0x21   :  { %684 = vmatprep.subr.mxu1 %v152_v31  ;;  %650 = vmatpush3.msra.mxu0 %v34_v30  ;;  %v432_v30 = vld [vmem:[%s1116_s8 + $0x18] sm:$0xff] }
  0x22   :  { %651 = vmatprep.mubr.f32.mxu0 %v32_v32  ;;  %685 = vmatpush3.msra.mxu1 %v152_v31  ;;  %v431_v31 = vld [vmem:[%s1116_s8 + $0x10] sm:$0xff]  ;;  %v430_v32 = vld [vmem:[%s1116_s8 + $0x8] sm:$0xff] }
  0x23   :  { %686 = vmatprep.mubr.f32.mxu1 %v150_v33  ;;  %652 = vmatmul.mubr.f32.vlgmr.msra.gmra.mxu0 %v33_v34  ;;  %v429_v33 = vld [vmem:[%s1116_s8] sm:$0xff] }
  0x24   :  { %687 = vmatmul.mubr.f32.vlgmr.msra.gmra.mxu1 %v151_v35  ;;  %689 = vmatprep.subr.mxu0 %v267_v36 }
  0x25   :  { %724 = vmatprep.subr.mxu1 %v149_v37  ;;  %690 = vmatpush3.msra.mxu0 %v267_v36 }
  0x26   :  { %725 = vmatpush3.msra.mxu1 %v149_v37  ;;  %691 = vmatprep.subr.mxu0 %v266_v38  ;;  %v528_v37 = vld [vmem:[%s1119_s7] ss:$0 sm:$0xff] }
  0x27   :  { %726 = vmatprep.subr.mxu1 %v148_v39  ;;  %692 = vmatpush3.msra.mxu0 %v266_v38 }
  0x28   :  { %727 = vmatpush3.msra.mxu1 %v148_v39  ;;  %693 = vmatprep.subr.mxu0 %v265_v40 }
  0x29   :  { %728 = vmatprep.subr.mxu1 %v147_v41  ;;  %694 = vmatpush3.msra.mxu0 %v265_v40 }
  0x2a   :  { %729 = vmatpush3.msra.mxu1 %v147_v41  ;;  %695 = vmatprep.subr.mxu0 %v264_v42 }
  0x2b   :  { %730 = vmatprep.subr.mxu1 %v146_v43  ;;  %696 = vmatpush3.msra.mxu0 %v264_v42 }
  0x2c   :  { %731 = vmatpush3.msra.mxu1 %v146_v43  ;;  %697 = vmatprep.subr.mxu0 %v263_v44 }
  0x2d   :  { %732 = vmatprep.subr.mxu1 %v145_v45  ;;  %698 = vmatpush3.msra.mxu0 %v263_v44 }
  0x2e   :  { %733 = vmatpush3.msra.mxu1 %v145_v45  ;;  %699 = vmatprep.subr.mxu0 %v262_v46 }
  0x2f   :  { %734 = vmatprep.subr.mxu1 %v144_v47  ;;  %700 = vmatpush3.msra.mxu0 %v262_v46 }
  0x30   :  { %735 = vmatpush3.msra.mxu1 %v144_v47  ;;  %701 = vmatprep.subr.mxu0 %v261_v48 }
  0x31   :  { %736 = vmatprep.subr.mxu1 %v143_v49  ;;  %702 = vmatpush3.msra.mxu0 %v261_v48 }
  0x32   :  { %737 = vmatpush3.msra.mxu1 %v143_v49  ;;  %703 = vmatprep.subr.mxu0 %v260_v50 }
  0x33   :  { %738 = vmatprep.subr.mxu1 %v142_v51  ;;  %704 = vmatpush3.msra.mxu0 %v260_v50 }
  0x34   :  { %739 = vmatpush3.msra.mxu1 %v142_v51  ;;  %705 = vmatprep.subr.mxu0 %v259_v52 }
  0x35   :  { %740 = vmatprep.subr.mxu1 %v141_v53  ;;  %706 = vmatpush3.msra.mxu0 %v259_v52 }
  0x36   :  { %741 = vmatpush3.msra.mxu1 %v141_v53  ;;  %707 = vmatprep.subr.mxu0 %v258_v54 }
  0x37   :  { %742 = vmatprep.subr.mxu1 %v140_v55  ;;  %708 = vmatpush3.msra.mxu0 %v258_v54 }
  0x38   :  { %743 = vmatpush3.msra.mxu1 %v140_v55  ;;  %709 = vmatprep.subr.mxu0 %v257_v56 }
  0x39   :  { %744 = vmatprep.subr.mxu1 %v139_v57  ;;  %710 = vmatpush3.msra.mxu0 %v257_v56 }
  0x3a   :  { %745 = vmatpush3.msra.mxu1 %v139_v57  ;;  %711 = vmatprep.subr.mxu0 %v256_v58 }
  0x3b   :  { %746 = vmatprep.subr.mxu1 %v138_v59  ;;  %712 = vmatpush3.msra.mxu0 %v256_v58 }
  0x3c   :  { %747 = vmatpush3.msra.mxu1 %v138_v59  ;;  %713 = vmatprep.subr.mxu0 %v255_v60 }
  0x3d   :  { %748 = vmatprep.subr.mxu1 %v137_v61  ;;  %714 = vmatpush3.msra.mxu0 %v255_v60 }
  0x3e   :  { %749 = vmatpush3.msra.mxu1 %v137_v61  ;;  %715 = vmatprep.subr.mxu0 %v254_v62 }
  0x3f   :  { %750 = vmatprep.subr.mxu1 %v136_v63  ;;  %716 = vmatpush3.msra.mxu0 %v254_v62 }
  0x40   :  { %751 = vmatpush3.msra.mxu1 %v136_v63  ;;  %717 = vmatprep.subr.mxu0 %v253_v0 }
  0x41   :  { %752 = vmatprep.subr.mxu1 %v135_v1  ;;  %718 = vmatpush3.msra.mxu0 %v253_v0 }
  0x42   :  { %753 = vmatpush3.msra.mxu1 %v135_v1  ;;  %719 = vmatprep.subr.mxu0 %v252_v2 }
  0x43   :  { %754 = vmatprep.subr.mxu1 %v134_v3  ;;  %720 = vmatpush3.msra.mxu0 %v252_v2 }
  0x44   :  { %755 = vmatpush3.msra.mxu1 %v134_v3  ;;  %759 = vmatprep.subr.mxu0 %v444_v4 }
  0xe3   :  { %v653_v7 = vpop.f32.mrf.mxu0 }
  0xe4   :  { %v688_v8 = vpop.f32.mrf.mxu1  ;;  %v129_v9 = vadd.f32 %v653_v7, %v526_v5 }
  0xe5   :  { %v247_v10 = vadd.f32 %v688_v8, %v527_v6  ;;  %v123_v11 = vpop.f32.mrf.mxu0 }
  0xe6   :  { %v241_v12 = vpop.f32.mrf.mxu1  ;;  %v124_v13 = vadd.f32 %v526_v5, %v123_v11  ;;  %v133_v17 = vmax.f32 %v129_v9, 0.0 }
  0xe7   :  { %v242_v14 = vadd.f32 %v527_v6, %v241_v12  ;;  %v251_v18 = vmax.f32 %v247_v10, 0.0 }
  0xe8   :  { %v132_v15 = vmax.f32 %v124_v13, 0.0 }
  0xe9   :  { %v250_v16 = vmax.f32 %v242_v14, 0.0 }
  0xea   :  { %756 = vmatprep.mubr.f32.mxu1 %v132_v15 }
  0xeb   :  { %721 = vmatprep.mubr.f32.mxu0 %v250_v16  ;;  %757 = vmatmul.mubr.f32.vlgmr.msra.gmra.mxu1 %v133_v17 }
  0xec   :  { %722 = vmatmul.mubr.f32.vlgmr.msra.gmra.mxu0 %v251_v18 }
  0xed   :  { %760 = vmatpush3.msra.mxu0 %v444_v4 }
  0xee   :  { %761 = vmatprep.subr.mxu0 %v443_v19 }
  0xef   :  { %762 = vmatpush3.msra.mxu0 %v443_v19 }
  0xf0   :  { %763 = vmatprep.subr.mxu0 %v442_v20 }
  0xf1   :  { %764 = vmatpush3.msra.mxu0 %v442_v20 }
  0xf2   :  { %765 = vmatprep.subr.mxu0 %v441_v21 }
  0xf3   :  { %766 = vmatpush3.msra.mxu0 %v441_v21 }
  0xf4   :  { %767 = vmatprep.subr.mxu0 %v440_v22 }
  0xf5   :  { %768 = vmatpush3.msra.mxu0 %v440_v22 }
  0xf6   :  { %769 = vmatprep.subr.mxu0 %v439_v23 }
  0xf7   :  { %770 = vmatpush3.msra.mxu0 %v439_v23 }
  0xf8   :  { %771 = vmatprep.subr.mxu0 %v438_v24 }
  0xf9   :  { %772 = vmatpush3.msra.mxu0 %v438_v24 }
  0xfa   :  { %773 = vmatprep.subr.mxu0 %v437_v25 }
  0xfb   :  { %774 = vmatpush3.msra.mxu0 %v437_v25 }
  0xfc   :  { %775 = vmatprep.subr.mxu0 %v436_v26 }
  0xfd   :  { %776 = vmatpush3.msra.mxu0 %v436_v26 }
  0xfe   :  { %777 = vmatprep.subr.mxu0 %v435_v27 }
  0xff   :  { %778 = vmatpush3.msra.mxu0 %v435_v27 }
 0x100   :  { %779 = vmatprep.subr.mxu0 %v434_v28 }
 0x101   :  { %780 = vmatpush3.msra.mxu0 %v434_v28 }
 0x102   :  { %781 = vmatprep.subr.mxu0 %v433_v29 }
 0x103   :  { %782 = vmatpush3.msra.mxu0 %v433_v29 }
 0x104   :  { %783 = vmatprep.subr.mxu0 %v432_v30 }
 0x105   :  { %784 = vmatpush3.msra.mxu0 %v432_v30 }
 0x106   :  { %785 = vmatprep.subr.mxu0 %v431_v31 }
 0x107   :  { %786 = vmatpush3.msra.mxu0 %v431_v31 }
 0x108   :  { %787 = vmatprep.subr.mxu0 %v430_v32 }
 0x109   :  { %788 = vmatpush3.msra.mxu0 %v430_v32 }
 0x10a   :  { %789 = vmatprep.subr.mxu0 %v429_v33 }
 0x10b   :  { %790 = vmatpush3.msra.mxu0 %v429_v33 }
 0x1ab   :  { %v758_v35 = vpop.f32.mrf.mxu1 }
 0x1ac   :  { %v723_v34 = vpop.f32.mrf.mxu0 }
 0x1ad   :  { %v415_v36 = vadd.f32 %v758_v35, %v723_v34  ;;  %v409_v39 = vpop.f32.mrf.mxu1 }
 0x1ae   :  { %v334_v38 = vpop.f32.mrf.mxu0 }
 0x1af   :  { %v410_v40 = vadd.f32 %v409_v39, %v334_v38  ;;  %v426_v41 = vadd.f32 %v528_v37, %v415_v36 }
 0x1b1   :  { %v425_v42 = vadd.f32 %v528_v37, %v410_v40  ;;  %v428_v44 = vmax.f32 %v426_v41, 0.0 }
 0x1b3   :  { %v427_v43 = vmax.f32 %v425_v42, 0.0 }
 0x1b5   :  { %791 = vmatprep.mubr.f32.mxu0 %v427_v43 }
 0x1b6   :  { %792 = vmatmul.mubr.f32.vlgmr.msra.gmra.mxu0 %v428_v44 }
 0x276   :  { %v793_v45 = vpop.f32.mrf.mxu0 }
 0x277   :  { %521 = vst [vmem:[%s1120_s9 + $0x8] sm:$0xff] %v793_v45 }
 0x278   :  { %v511_v46 = vpop.f32.mrf.mxu0 }
 0x279   :  { %520 = vst [vmem:[%s1120_s9] sm:$0xff] %v511_v46 }

// kernel: _head_impl.1
= control target key start
LH: loop header
LB: loop body
LE: loop exit
PB: predicated region body
PF: predicated region fallthrough
CT: control target
= control target key end

     0   :  { %s1111_s2 = inlined_call_operand.vmem [shape: f32[128,128], index: 2, kind: input, shape index: {}]   ;;  %s1112_s4 = inlined_call_operand.vmem [shape: f32[128,128], index: 4, kind: input, shape index: {}]   ;;  %s1113_s0 = inlined_call_operand.vmem [shape: f32[16,128], index: 0, kind: input, shape index: {}]   ;;  %s1114_s1 = inlined_call_operand.vmem [shape: f32[16,128], index: 1, kind: input, shape index: {}]   ;;  %s1115_s6 = inlined_call_operand.vmem [shape: f32[256,128], index: 6, kind: input, shape index: {}]   ;;  %s1116_s8 = inlined_call_operand.vmem [shape: f32[128,128], index: 8, kind: input, shape index: {}]   ;;  %s1117_s3 = inlined_call_operand.vmem [shape: f32[1,128], index: 3, kind: input, shape index: {}]   ;;  %s1118_s5 = inlined_call_operand.vmem [shape: f32[1,128], index: 5, kind: input, shape index: {}]   ;;  %s1119_s7 = inlined_call_operand.vmem [shape: f32[1,128], index: 7, kind: input, shape index: {}]   ;;  %s1120_s9 = inlined_call_operand.vmem [shape: f32[16,128], index: 9, kind: output, shape index: {}]  }
   0x1   :  { %v49_v0 = vld [vmem:[%s1111_s2 + $0x78] sm:$0xff]  ;;  %v48_v2 = vld [vmem:[%s1111_s2 + $0x70] sm:$0xff]  ;;  %v47_v4 = vld [vmem:[%s1111_s2 + $0x68] sm:$0xff] }
   0x2   :  { %v167_v1 = vld [vmem:[%s1112_s4 + $0x78] sm:$0xff]  ;;  %619 = vmatprep.subr.mxu0 %v49_v0  ;;  %v166_v3 = vld [vmem:[%s1112_s4 + $0x70] sm:$0xff]  ;;  %v165_v5 = vld [vmem:[%s1112_s4 + $0x68] sm:$0xff] }
   0x3   :  { %654 = vmatprep.subr.mxu1 %v167_v1  ;;  %620 = vmatpush3.msra.mxu0 %v49_v0  ;;  %v46_v6 = vld [vmem:[%s1111_s2 + $0x60] sm:$0xff]  ;;  %v45_v8 = vld [vmem:[%s1111_s2 + $0x58] sm:$0xff]  ;;  %v44_v10 = vld [vmem:[%s1111_s2 + $0x50] sm:$0xff] }
   0x4   :  { %655 = vmatpush3.msra.mxu1 %v167_v1  ;;  %621 = vmatprep.subr.mxu0 %v48_v2  ;;  %v164_v7 = vld [vmem:[%s1112_s4 + $0x60] sm:$0xff]  ;;  %v163_v9 = vld [vmem:[%s1112_s4 + $0x58] sm:$0xff]  ;;  %v162_v11 = vld [vmem:[%s1112_s4 + $0x50] sm:$0xff] }
   0x5   :  { %656 = vmatprep.subr.mxu1 %v166_v3  ;;  %622 = vmatpush3.msra.mxu0 %v48_v2  ;;  %v43_v12 = vld [vmem:[%s1111_s2 + $0x48] sm:$0xff]  ;;  %v42_v14 = vld [vmem:[%s1111_s2 + $0x40] sm:$0xff]  ;;  %v41_v16 = vld [vmem:[%s1111_s2 + $0x38] sm:$0xff] }
   0x6   :  { %657 = vmatpush3.msra.mxu1 %v166_v3  ;;  %623 = vmatprep.subr.mxu0 %v47_v4  ;;  %v161_v13 = vld [vmem:[%s1112_s4 + $0x48] sm:$0xff]  ;;  %v160_v15 = vld [vmem:[%s1112_s4 + $0x40] sm:$0xff]  ;;  %v159_v17 = vld [vmem:[%s1112_s4 + $0x38] sm:$0xff] }
   0x7   :  { %658 = vmatprep.subr.mxu1 %v165_v5  ;;  %624 = vmatpush3.msra.mxu0 %v47_v4  ;;  %v40_v18 = vld [vmem:[%s1111_s2 + $0x30] sm:$0xff]  ;;  %v39_v20 = vld [vmem:[%s1111_s2 + $0x28] sm:$0xff]  ;;  %v38_v22 = vld [vmem:[%s1111_s2 + $0x20] sm:$0xff] }
   0x8   :  { %659 = vmatpush3.msra.mxu1 %v165_v5  ;;  %625 = vmatprep.subr.mxu0 %v46_v6  ;;  %v158_v19 = vld [vmem:[%s1112_s4 + $0x30] sm:$0xff]  ;;  %v157_v21 = vld [vmem:[%s1112_s4 + $0x28] sm:$0xff]  ;;  %v156_v23 = vld [vmem:[%s1112_s4 + $0x20] sm:$0xff] }
   0x9   :  { %660 = vmatprep.subr.mxu1 %v164_v7  ;;  %626 = vmatpush3.msra.mxu0 %v46_v6  ;;  %v37_v24 = vld [vmem:[%s1111_s2 + $0x18] sm:$0xff]  ;;  %v36_v26 = vld [vmem:[%s1111_s2 + $0x10] sm:$0xff]  ;;  %v35_v28 = vld [vmem:[%s1111_s2 + $0x8] sm:$0xff] }
   0xa   :  { %661 = vmatpush3.msra.mxu1 %v164_v7  ;;  %627 = vmatprep.subr.mxu0 %v45_v8  ;;  %v155_v25 = vld [vmem:[%s1112_s4 + $0x18] sm:$0xff]  ;;  %v154_v27 = vld [vmem:[%s1112_s4 + $0x10] sm:$0xff]  ;;  %v153_v29 = vld [vmem:[%s1112_s4 + $0x8] sm:$0xff] }
   0xb   :  { %662 = vmatprep.subr.mxu1 %v163_v9  ;;  %628 = vmatpush3.msra.mxu0 %v45_v8  ;;  %v34_v30 = vld [vmem:[%s1111_s2] sm:$0xff]  ;;  %v33_v34 = vld [vmem:[%s1113_s0 + $0x8] sm:$0xff]  ;;  %v267_v36 = vld [vmem:[%s1115_s6 + $0xf8] sm:$0xff] }
   0xc   :  { %663 = vmatpush3.msra.mxu1 %v163_v9  ;;  %629 = vmatprep.subr.mxu0 %v44_v10  ;;  %v152_v31 = vld [vmem:[%s1112_s4] sm:$0xff]  ;;  %v151_v35 = vld [vmem:[%s1114_s1 + $0x8] sm:$0xff]  ;;  %v149_v37 = vld [vmem:[%s1115_s6 + $0x78] sm:$0xff] }
   0xd   :  { %664 = vmatprep.subr.mxu1 %v162_v11  ;;  %630 = vmatpush3.msra.mxu0 %v44_v10  ;;  %v32_v32 = vld [vmem:[%s1113_s0] sm:$0xff]  ;;  %v266_v38 = vld [vmem:[%s1115_s6 + $0xf0] sm:$0xff]  ;;  %v265_v40 = vld [vmem:[%s1115_s6 + $0xe8] sm:$0xff] }
   0xe   :  { %665 = vmatpush3.msra.mxu1 %v162_v11  ;;  %631 = vmatprep.subr.mxu0 %v43_v12  ;;  %v150_v33 = vld [vmem:[%s1114_s1] sm:$0xff]  ;;  %v148_v39 = vld [vmem:[%s1115_s6 + $0x70] sm:$0xff]  ;;  %v147_v41 = vld [vmem:[%s1115_s6 + $0x68] sm:$0xff] }
   0xf   :  { %666 = vmatprep.subr.mxu1 %v161_v13  ;;  %632 = vmatpush3.msra.mxu0 %v43_v12  ;;  %v264_v42 = vld [vmem:[%s1115_s6 + $0xe0] sm:$0xff]  ;;  %v263_v44 = vld [vmem:[%s1115_s6 + $0xd8] sm:$0xff]  ;;  %v262_v46 = vld [vmem:[%s1115_s6 + $0xd0] sm:$0xff] }
  0x10   :  { %667 = vmatpush3.msra.mxu1 %v161_v13  ;;  %633 = vmatprep.subr.mxu0 %v42_v14  ;;  %v146_v43 = vld [vmem:[%s1115_s6 + $0x60] sm:$0xff]  ;;  %v145_v45 = vld [vmem:[%s1115_s6 + $0x58] sm:$0xff]  ;;  %v144_v47 = vld [vmem:[%s1115_s6 + $0x50] sm:$0xff] }
  0x11   :  { %668 = vmatprep.subr.mxu1 %v160_v15  ;;  %634 = vmatpush3.msra.mxu0 %v42_v14  ;;  %v261_v48 = vld [vmem:[%s1115_s6 + $0xc8] sm:$0xff]  ;;  %v260_v50 = vld [vmem:[%s1115_s6 + $0xc0] sm:$0xff]  ;;  %v259_v52 = vld [vmem:[%s1115_s6 + $0xb8] sm:$0xff] }
  0x12   :  { %669 = vmatpush3.msra.mxu1 %v160_v15  ;;  %635 = vmatprep.subr.mxu0 %v41_v16  ;;  %v143_v49 = vld [vmem:[%s1115_s6 + $0x48] sm:$0xff]  ;;  %v142_v51 = vld [vmem:[%s1115_s6 + $0x40] sm:$0xff]  ;;  %v141_v53 = vld [vmem:[%s1115_s6 + $0x38] sm:$0xff] }
  0x13   :  { %670 = vmatprep.subr.mxu1 %v159_v17  ;;  %636 = vmatpush3.msra.mxu0 %v41_v16  ;;  %v258_v54 = vld [vmem:[%s1115_s6 + $0xb0] sm:$0xff]  ;;  %v257_v56 = vld [vmem:[%s1115_s6 + $0xa8] sm:$0xff]  ;;  %v256_v58 = vld [vmem:[%s1115_s6 + $0xa0] sm:$0xff] }
  0x14   :  { %671 = vmatpush3.msra.mxu1 %v159_v17  ;;  %637 = vmatprep.subr.mxu0 %v40_v18  ;;  %v140_v55 = vld [vmem:[%s1115_s6 + $0x30] sm:$0xff]  ;;  %v139_v57 = vld [vmem:[%s1115_s6 + $0x28] sm:$0xff]  ;;  %v138_v59 = vld [vmem:[%s1115_s6 + $0x20] sm:$0xff] }
  0x15   :  { %672 = vmatprep.subr.mxu1 %v158_v19  ;;  %638 = vmatpush3.msra.mxu0 %v40_v18  ;;  %v255_v60 = vld [vmem:[%s1115_s6 + $0x98] sm:$0xff]  ;;  %v254_v62 = vld [vmem:[%s1115_s6 + $0x90] sm:$0xff]  ;;  %v253_v0 = vld [vmem:[%s1115_s6 + $0x88] sm:$0xff] }
  0x16   :  { %673 = vmatpush3.msra.mxu1 %v158_v19  ;;  %639 = vmatprep.subr.mxu0 %v39_v20  ;;  %v137_v61 = vld [vmem:[%s1115_s6 + $0x18] sm:$0xff]  ;;  %v136_v63 = vld [vmem:[%s1115_s6 + $0x10] sm:$0xff]  ;;  %v135_v1 = vld [vmem:[%s1115_s6 + $0x8] sm:$0xff] }
  0x17   :  { %674 = vmatprep.subr.mxu1 %v157_v21  ;;  %640 = vmatpush3.msra.mxu0 %v39_v20  ;;  %v252_v2 = vld [vmem:[%s1115_s6 + $0x80] sm:$0xff]  ;;  %v444_v4 = vld [vmem:[%s1116_s8 + $0x78] sm:$0xff]  ;;  %v443_v19 = vld [vmem:[%s1116_s8 + $0x70] sm:$0xff] }
  0x18   :  { %675 = vmatpush3.msra.mxu1 %v157_v21  ;;  %641 = vmatprep.subr.mxu0 %v38_v22  ;;  %v134_v3 = vld [vmem:[%s1115_s6] sm:$0xff]  ;;  %v442_v20 = vld [vmem:[%s1116_s8 + $0x68] sm:$0xff] }
  0x19   :  { %676 = vmatprep.subr.mxu1 %v156_v23  ;;  %642 = vmatpush3.msra.mxu0 %v38_v22  ;;  %v526_v5 = vld [vmem:[%s1117_s3] ss:$0 sm:$0xff]  ;;  %v440_v22 = vld [vmem:[%s1116_s8 + $0x58] sm:$0xff] }
  0x1a   :  { %677 = vmatpush3.msra.mxu1 %v156_v23  ;;  %643 = vmatprep.subr.mxu0 %v37_v24  ;;  %v527_v6 = vld [vmem:[%s1118_s5] ss:$0 sm:$0xff]  ;;  %v439_v23 = vld [vmem:[%s1116_s8 + $0x50] sm:$0xff] }
  0x1b   :  { %678 = vmatprep.subr.mxu1 %v155_v25  ;;  %644 = vmatpush3.msra.mxu0 %v37_v24  ;;  %v441_v21 = vld [vmem:[%s1116_s8 + $0x60] sm:$0xff]  ;;  %v438_v24 = vld [vmem:[%s1116_s8 + $0x48] sm:$0xff] }
  0x1c   :  { %679 = vmatpush3.msra.mxu1 %v155_v25  ;;  %645 = vmatprep.subr.mxu0 %v36_v26  ;;  %v437_v25 = vld [vmem:[%s1116_s8 + $0x40] sm:$0xff] }
  0x1d   :  { %680 = vmatprep.subr.mxu1 %v154_v27  ;;  %646 = vmatpush3.msra.mxu0 %v36_v26  ;;  %v436_v26 = vld [vmem:[%s1116_s8 + $0x38] sm:$0xff] }
  0x1e   :  { %681 = vmatpush3.msra.mxu1 %v154_v27  ;;  %647 = vmatprep.subr.mxu0 %v35_v28  ;;  %v435_v27 = vld [vmem:[%s1116_s8 + $0x30] sm:$0xff] }
  0x1f   :  { %682 = vmatprep.subr.mxu1 %v153_v29  ;;  %648 = vmatpush3.msra.mxu0 %v35_v28  ;;  %v434_v28 = vld [vmem:[%s1116_s8 + $0x28] sm:$0xff] }
  0x20   :  { %683 = vmatpush3.msra.mxu1 %v153_v29  ;;  %649 = vmatprep.subr.mxu0 %v34_v30  ;;  %v433_v29 = vld [vmem:[%s1116_s8 + $0x20] sm:$0xff] }
  0x21   :  { %684 = vmatprep.subr.mxu1 %v152_v31  ;;  %650 = vmatpush3.msra.mxu0 %v34_v30  ;;  %v432_v30 = vld [vmem:[%s1116_s8 + $0x18] sm:$0xff] }
  0x22   :  { %651 = vmatprep.mubr.f32.mxu0 %v32_v32  ;;  %685 = vmatpush3.msra.mxu1 %v152_v31  ;;  %v431_v31 = vld [vmem:[%s1116_s8 + $0x10] sm:$0xff]  ;;  %v430_v32 = vld [vmem:[%s1116_s8 + $0x8] sm:$0xff] }
  0x23   :  { %686 = vmatprep.mubr.f32.mxu1 %v150_v33  ;;  %652 = vmatmul.mubr.f32.vlgmr.msra.gmra.mxu0 %v33_v34  ;;  %v429_v33 = vld [vmem:[%s1116_s8] sm:$0xff] }
  0x24   :  { %687 = vmatmul.mubr.f32.vlgmr.msra.gmra.mxu1 %v151_v35  ;;  %689 = vmatprep.subr.mxu0 %v267_v36 }
  0x25   :  { %724 = vmatprep.subr.mxu1 %v149_v37  ;;  %690 = vmatpush3.msra.mxu0 %v267_v36 }
  0x26   :  { %725 = vmatpush3.msra.mxu1 %v149_v37  ;;  %691 = vmatprep.subr.mxu0 %v266_v38  ;;  %v528_v37 = vld [vmem:[%s1119_s7] ss:$0 sm:$0xff] }
  0x27   :  { %726 = vmatprep.subr.mxu1 %v148_v39  ;;  %692 = vmatpush3.msra.mxu0 %v266_v38 }
  0x28   :  { %727 = vmatpush3.msra.mxu1 %v148_v39  ;;  %693 = vmatprep.subr.mxu0 %v265_v40 }
  0x29   :  { %728 = vmatprep.subr.mxu1 %v147_v41  ;;  %694 = vmatpush3.msra.mxu0 %v265_v40 }
  0x2a   :  { %729 = vmatpush3.msra.mxu1 %v147_v41  ;;  %695 = vmatprep.subr.mxu0 %v264_v42 }
  0x2b   :  { %730 = vmatprep.subr.mxu1 %v146_v43  ;;  %696 = vmatpush3.msra.mxu0 %v264_v42 }
  0x2c   :  { %731 = vmatpush3.msra.mxu1 %v146_v43  ;;  %697 = vmatprep.subr.mxu0 %v263_v44 }
  0x2d   :  { %732 = vmatprep.subr.mxu1 %v145_v45  ;;  %698 = vmatpush3.msra.mxu0 %v263_v44 }
  0x2e   :  { %733 = vmatpush3.msra.mxu1 %v145_v45  ;;  %699 = vmatprep.subr.mxu0 %v262_v46 }
  0x2f   :  { %734 = vmatprep.subr.mxu1 %v144_v47  ;;  %700 = vmatpush3.msra.mxu0 %v262_v46 }
  0x30   :  { %735 = vmatpush3.msra.mxu1 %v144_v47  ;;  %701 = vmatprep.subr.mxu0 %v261_v48 }
  0x31   :  { %736 = vmatprep.subr.mxu1 %v143_v49  ;;  %702 = vmatpush3.msra.mxu0 %v261_v48 }
  0x32   :  { %737 = vmatpush3.msra.mxu1 %v143_v49  ;;  %703 = vmatprep.subr.mxu0 %v260_v50 }
  0x33   :  { %738 = vmatprep.subr.mxu1 %v142_v51  ;;  %704 = vmatpush3.msra.mxu0 %v260_v50 }
  0x34   :  { %739 = vmatpush3.msra.mxu1 %v142_v51  ;;  %705 = vmatprep.subr.mxu0 %v259_v52 }
  0x35   :  { %740 = vmatprep.subr.mxu1 %v141_v53  ;;  %706 = vmatpush3.msra.mxu0 %v259_v52 }
  0x36   :  { %741 = vmatpush3.msra.mxu1 %v141_v53  ;;  %707 = vmatprep.subr.mxu0 %v258_v54 }
  0x37   :  { %742 = vmatprep.subr.mxu1 %v140_v55  ;;  %708 = vmatpush3.msra.mxu0 %v258_v54 }
  0x38   :  { %743 = vmatpush3.msra.mxu1 %v140_v55  ;;  %709 = vmatprep.subr.mxu0 %v257_v56 }
  0x39   :  { %744 = vmatprep.subr.mxu1 %v139_v57  ;;  %710 = vmatpush3.msra.mxu0 %v257_v56 }
  0x3a   :  { %745 = vmatpush3.msra.mxu1 %v139_v57  ;;  %711 = vmatprep.subr.mxu0 %v256_v58 }
  0x3b   :  { %746 = vmatprep.subr.mxu1 %v138_v59  ;;  %712 = vmatpush3.msra.mxu0 %v256_v58 }
  0x3c   :  { %747 = vmatpush3.msra.mxu1 %v138_v59  ;;  %713 = vmatprep.subr.mxu0 %v255_v60 }
  0x3d   :  { %748 = vmatprep.subr.mxu1 %v137_v61  ;;  %714 = vmatpush3.msra.mxu0 %v255_v60 }
  0x3e   :  { %749 = vmatpush3.msra.mxu1 %v137_v61  ;;  %715 = vmatprep.subr.mxu0 %v254_v62 }
  0x3f   :  { %750 = vmatprep.subr.mxu1 %v136_v63  ;;  %716 = vmatpush3.msra.mxu0 %v254_v62 }
  0x40   :  { %751 = vmatpush3.msra.mxu1 %v136_v63  ;;  %717 = vmatprep.subr.mxu0 %v253_v0 }
  0x41   :  { %752 = vmatprep.subr.mxu1 %v135_v1  ;;  %718 = vmatpush3.msra.mxu0 %v253_v0 }
  0x42   :  { %753 = vmatpush3.msra.mxu1 %v135_v1  ;;  %719 = vmatprep.subr.mxu0 %v252_v2 }
  0x43   :  { %754 = vmatprep.subr.mxu1 %v134_v3  ;;  %720 = vmatpush3.msra.mxu0 %v252_v2 }
  0x44   :  { %755 = vmatpush3.msra.mxu1 %v134_v3  ;;  %759 = vmatprep.subr.mxu0 %v444_v4 }
  0xe3   :  { %v653_v7 = vpop.f32.mrf.mxu0 }
  0xe4   :  { %v688_v8 = vpop.f32.mrf.mxu1  ;;  %v129_v9 = vadd.f32 %v653_v7, %v526_v5 }
  0xe5   :  { %v247_v10 = vadd.f32 %v688_v8, %v527_v6  ;;  %v123_v11 = vpop.f32.mrf.mxu0 }
  0xe6   :  { %v241_v12 = vpop.f32.mrf.mxu1  ;;  %v124_v13 = vadd.f32 %v526_v5, %v123_v11  ;;  %v133_v17 = vmax.f32 %v129_v9, 0.0 }
  0xe7   :  { %v242_v14 = vadd.f32 %v527_v6, %v241_v12  ;;  %v251_v18 = vmax.f32 %v247_v10, 0.0 }
  0xe8   :  { %v132_v15 = vmax.f32 %v124_v13, 0.0 }
  0xe9   :  { %v250_v16 = vmax.f32 %v242_v14, 0.0 }
  0xea   :  { %756 = vmatprep.mubr.f32.mxu1 %v132_v15 }
  0xeb   :  { %721 = vmatprep.mubr.f32.mxu0 %v250_v16  ;;  %757 = vmatmul.mubr.f32.vlgmr.msra.gmra.mxu1 %v133_v17 }
  0xec   :  { %722 = vmatmul.mubr.f32.vlgmr.msra.gmra.mxu0 %v251_v18 }
  0xed   :  { %760 = vmatpush3.msra.mxu0 %v444_v4 }
  0xee   :  { %761 = vmatprep.subr.mxu0 %v443_v19 }
  0xef   :  { %762 = vmatpush3.msra.mxu0 %v443_v19 }
  0xf0   :  { %763 = vmatprep.subr.mxu0 %v442_v20 }
  0xf1   :  { %764 = vmatpush3.msra.mxu0 %v442_v20 }
  0xf2   :  { %765 = vmatprep.subr.mxu0 %v441_v21 }
  0xf3   :  { %766 = vmatpush3.msra.mxu0 %v441_v21 }
  0xf4   :  { %767 = vmatprep.subr.mxu0 %v440_v22 }
  0xf5   :  { %768 = vmatpush3.msra.mxu0 %v440_v22 }
  0xf6   :  { %769 = vmatprep.subr.mxu0 %v439_v23 }
  0xf7   :  { %770 = vmatpush3.msra.mxu0 %v439_v23 }
  0xf8   :  { %771 = vmatprep.subr.mxu0 %v438_v24 }
  0xf9   :  { %772 = vmatpush3.msra.mxu0 %v438_v24 }
  0xfa   :  { %773 = vmatprep.subr.mxu0 %v437_v25 }
  0xfb   :  { %774 = vmatpush3.msra.mxu0 %v437_v25 }
  0xfc   :  { %775 = vmatprep.subr.mxu0 %v436_v26 }
  0xfd   :  { %776 = vmatpush3.msra.mxu0 %v436_v26 }
  0xfe   :  { %777 = vmatprep.subr.mxu0 %v435_v27 }
  0xff   :  { %778 = vmatpush3.msra.mxu0 %v435_v27 }
 0x100   :  { %779 = vmatprep.subr.mxu0 %v434_v28 }
 0x101   :  { %780 = vmatpush3.msra.mxu0 %v434_v28 }
 0x102   :  { %781 = vmatprep.subr.mxu0 %v433_v29 }
 0x103   :  { %782 = vmatpush3.msra.mxu0 %v433_v29 }
 0x104   :  { %783 = vmatprep.subr.mxu0 %v432_v30 }
 0x105   :  { %784 = vmatpush3.msra.mxu0 %v432_v30 }
 0x106   :  { %785 = vmatprep.subr.mxu0 %v431_v31 }
 0x107   :  { %786 = vmatpush3.msra.mxu0 %v431_v31 }
 0x108   :  { %787 = vmatprep.subr.mxu0 %v430_v32 }
 0x109   :  { %788 = vmatpush3.msra.mxu0 %v430_v32 }
 0x10a   :  { %789 = vmatprep.subr.mxu0 %v429_v33 }
 0x10b   :  { %790 = vmatpush3.msra.mxu0 %v429_v33 }
 0x1ab   :  { %v758_v35 = vpop.f32.mrf.mxu1 }
 0x1ac   :  { %v723_v34 = vpop.f32.mrf.mxu0 }
 0x1ad   :  { %v415_v36 = vadd.f32 %v758_v35, %v723_v34  ;;  %v409_v39 = vpop.f32.mrf.mxu1 }
 0x1ae   :  { %v334_v38 = vpop.f32.mrf.mxu0 }
 0x1af   :  { %v410_v40 = vadd.f32 %v409_v39, %v334_v38  ;;  %v426_v41 = vadd.f32 %v528_v37, %v415_v36 }
 0x1b1   :  { %v425_v42 = vadd.f32 %v528_v37, %v410_v40  ;;  %v428_v44 = vmax.f32 %v426_v41, 0.0 }
 0x1b3   :  { %v427_v43 = vmax.f32 %v425_v42, 0.0 }
 0x1b5   :  { %791 = vmatprep.mubr.f32.mxu0 %v427_v43 }
 0x1b6   :  { %792 = vmatmul.mubr.f32.vlgmr.msra.gmra.mxu0 %v428_v44 }
 0x276   :  { %v793_v45 = vpop.f32.mrf.mxu0 }
 0x277   :  { %521 = vst [vmem:[%s1120_s9 + $0x8] sm:$0xff] %v793_v45 }
 0x278   :  { %v511_v46 = vpop.f32.mrf.mxu0 }
 0x279   :  { %520 = vst [vmem:[%s1120_s9] sm:$0xff] %v511_v46 }

</bundles_post_ra>
